<compile_context>
chip_gen: v5e
topology: v5e:2x2
jax: 0.10.0
libtpu: 0.0.40
codegen_flags: <defaults>
</compile_context>

<pallas_src>
import functools

import jax
import jax.numpy as jnp
from jax.experimental import pallas as pl
from jax.experimental.pallas import tpu as pltpu

EPS = 1e-5


def _conv1x1(w, b, x):
    """Batched 1x1 conv: w (Cout, Cin), b (Cout, 1), x (N, Cin, P) -> (N, Cout, P)."""
    cout, cin = w.shape
    if cin >= 16 and cout >= 16:
        # MXU path for non-tiny channel counts (per-batch matmul, leading-dim stack).
        y = jnp.stack(
            [jnp.dot(w, x[n], preferred_element_type=jnp.float32)
             for n in range(x.shape[0])], axis=0)
    else:
        # VPU broadcast-FMA path: at Cin/Cout <= 8 the MXU would be <4% utilised
        # and force (8,128) padding; a handful of FMAs over lane-dense tiles wins.
        y = w[:, 0:1][None] * x[:, 0:1, :]
        for c in range(1, cin):
            y = y + w[:, c:c + 1][None] * x[:, c:c + 1, :]
    return y + b[None]


def _stage_stats(h, inv_p, inv_n):
    """One-pass per-(n,c) InstanceNorm stats + fused-BatchNorm inverse std."""
    mu = jnp.sum(h, axis=-1, keepdims=True) * inv_p               # (N, C, 1)
    ex2 = jnp.sum(h * h, axis=-1, keepdims=True) * inv_p
    var = jnp.maximum(ex2 - mu * mu, 0.0)                         # biased var
    # After IN, BN batch mean == 0 and BN batch var = mean_n(var / (var + eps)).
    bnvar = jnp.sum(var / (var + EPS), axis=0, keepdims=True) * inv_n  # (1, C, 1)
    inv_bn = jax.lax.rsqrt(bnvar + EPS)
    return mu, var, inv_bn


def _resnet_block_kernel(x_ref, w1_ref, b1_ref, g1_ref, be1_ref,
                         w2_ref, b2_ref, g2_ref, be2_ref, *rest, pre):
    if pre:
        wr_ref, br_ref, o_ref = rest
    else:
        (o_ref,) = rest

    n_batch, _, p = x_ref.shape
    inv_p = 1.0 / float(p)
    inv_n = 1.0 / float(n_batch)

    x = x_ref[...].astype(jnp.float32)                            # (N, Cin, P)

    # Hoist all (tiny) per-channel parameter loads once; columns as (1, C, 1).
    w1 = w1_ref[...].astype(jnp.float32)
    b1 = b1_ref[...].astype(jnp.float32)
    g1 = g1_ref[...].astype(jnp.float32)[None]
    be1 = be1_ref[...].astype(jnp.float32)[None]
    w2 = w2_ref[...].astype(jnp.float32)
    b2 = b2_ref[...].astype(jnp.float32)
    g2 = g2_ref[...].astype(jnp.float32)[None]
    be2 = be2_ref[...].astype(jnp.float32)[None]

    # ---- stage 1: conv1 -> fused IN+BN (single scale/shift) -> ReLU ----
    h1 = _conv1x1(w1, b1, x)                                      # (N, Cout, P)
    mu1, var1, inv_bn1 = _stage_stats(h1, inv_p, inv_n)
    scale1 = g1 * jax.lax.rsqrt(var1 + EPS) * inv_bn1             # (N, Cout, 1)
    shift1 = be1 - mu1 * scale1
    y1 = jnp.maximum(h1 * scale1 + shift1, 0.0)

    # ---- stage 2: conv2 -> fused IN+BN ----
    h2 = _conv1x1(w2, b2, y1)
    mu2, var2, inv_bn2 = _stage_stats(h2, inv_p, inv_n)
    scale2 = g2 * jax.lax.rsqrt(var2 + EPS) * inv_bn2
    shift2 = be2 - mu2 * scale2

    # ---- residual + final ReLU, stored directly (lane-dense unmasked vst) ----
    if pre:
        r = _conv1x1(wr_ref[...].astype(jnp.float32),
                     br_ref[...].astype(jnp.float32), x)
    else:
        r = x
    o_ref[...] = jnp.maximum(h2 * scale2 + shift2 + r, 0.0).astype(o_ref.dtype)


def resnet_block_pallas(x_nchw, params, *, pre=True):
    N, Cin, H, W = x_nchw.shape
    Cout = params["w1"].shape[0]
    P = H * W
    if not pre and Cin != Cout:
        raise ValueError("pre=False requires Cin == Cout (identity residual).")

    xk = x_nchw.reshape(N, Cin, P)       # pure reshape: no HBM transpose

    args = [xk,
            params["w1"], params["b1"], params["g1"], params["be1"],
            params["w2"], params["b2"], params["g2"], params["be2"]]
    if pre:
        args += [params["wr"], params["br"]]

    out = pl.pallas_call(
        functools.partial(_resnet_block_kernel, pre=pre),
        out_shape=jax.ShapeDtypeStruct((N, Cout, P), jnp.float32),
        in_specs=[pl.BlockSpec(memory_space=pltpu.MemorySpace.VMEM)] * len(args),
        out_specs=pl.BlockSpec(memory_space=pltpu.MemorySpace.VMEM),
        compiler_params=pltpu.CompilerParams(vmem_limit_bytes=32 * 1024 * 1024),
    )(*args)

    return out.reshape(N, Cout, H, W)    # pure reshape: no HBM transpose


# ---------------- pure-JAX reference (NCHW, mirrors PyTorch) ----------------
def resnet_block_ref(x, params, *, pre=True):
    def conv(inp, w, b):
        return jnp.einsum("oc,nchw->nohw", w, inp) + b.reshape(1, -1, 1, 1)

    def inorm(y):
        mu = jnp.mean(y, axis=(2, 3), keepdims=True)
        var = jnp.mean((y - mu) ** 2, axis=(2, 3), keepdims=True)
        return (y - mu) / jnp.sqrt(var + EPS)

    def bnorm(y, g, b):
        mu = jnp.mean(y, axis=(0, 2, 3), keepdims=True)
        var = jnp.mean((y - mu) ** 2, axis=(0, 2, 3), keepdims=True)
        return ((y - mu) / jnp.sqrt(var + EPS)) * g.reshape(1, -1, 1, 1) \
               + b.reshape(1, -1, 1, 1)

    h = conv(x, params["w1"], params["b1"])
    h = bnorm(inorm(h), params["g1"], params["be1"])
    h = jnp.maximum(h, 0.0)
    h = conv(h, params["w2"], params["b2"])
    h = bnorm(inorm(h), params["g2"], params["be2"])
    x1 = conv(x, params["wr"], params["br"]) if pre else x
    return jnp.maximum(h + x1, 0.0)


def init_params(key, cin, cout):
    ks = jax.random.split(key, 10)

    def conv_w(k, ci, co):      # PyTorch Conv2d weight layout (Cout, Cin)
        bound = 1.0 / (ci ** 0.5)
        return jax.random.uniform(k, (co, ci), jnp.float32, -bound, bound)

    def vec(k, co, base=0.0):   # per-channel vectors as (Cout, 1)
        return base + 0.1 * jax.random.normal(k, (co, 1), jnp.float32)

    return {
        "w1": conv_w(ks[0], cin, cout),  "b1": vec(ks[1], cout),
        "g1": vec(ks[2], cout, 1.0),     "be1": vec(ks[3], cout),
        "w2": conv_w(ks[4], cout, cout), "b2": vec(ks[5], cout),
        "g2": vec(ks[6], cout, 1.0),     "be2": vec(ks[7], cout),
        "wr": conv_w(ks[8], cin, cout),  "br": vec(ks[9], cout),
    }


if __name__ == "__main__":
    key = jax.random.PRNGKey(0)
    kx, kp, kx2, kp2 = jax.random.split(key, 4)

    # pre=True: projection (1x1 conv) on the residual branch, Cin != Cout.
    N, Cin, Cout, H, W = 2, 4, 8, 16, 16
    x = jax.random.normal(kx, (N, Cin, H, W), jnp.float32)
    params = init_params(kp, Cin, Cout)
    out = jax.block_until_ready(resnet_block_pallas(x, params, pre=True))
    ref = resnet_block_ref(x, params, pre=True)
    assert out.shape == (N, Cout, H, W)
    err = float(jnp.max(jnp.abs(out - ref)))
    assert jnp.allclose(out, ref, atol=1e-3, rtol=1e-3), f"max abs err {err}"

    # pre=False: identity residual (requires Cin == Cout).
    x2 = jax.random.normal(kx2, (N, Cout, H, W), jnp.float32)
    params2 = init_params(kp2, Cout, Cout)
    out2 = jax.block_until_ready(resnet_block_pallas(x2, params2, pre=False))
    ref2 = resnet_block_ref(x2, params2, pre=False)
    err2 = float(jnp.max(jnp.abs(out2 - ref2)))
    assert jnp.allclose(out2, ref2, atol=1e-3, rtol=1e-3), f"max abs err {err2}"

    print("KERNEL_OK")
</pallas_src>

<mosaic_0001>
module attributes {stable_mosaic.version = 11 : i64} {
  func.func @_resnet_block_kernel(%arg0: memref<2x4x256xf32, #tpu.memory_space<vmem>>, %arg1: memref<8x4xf32, #tpu.memory_space<vmem>>, %arg2: memref<8x1xf32, #tpu.memory_space<vmem>>, %arg3: memref<8x1xf32, #tpu.memory_space<vmem>>, %arg4: memref<8x1xf32, #tpu.memory_space<vmem>>, %arg5: memref<8x8xf32, #tpu.memory_space<vmem>>, %arg6: memref<8x1xf32, #tpu.memory_space<vmem>>, %arg7: memref<8x1xf32, #tpu.memory_space<vmem>>, %arg8: memref<8x1xf32, #tpu.memory_space<vmem>>, %arg9: memref<8x4xf32, #tpu.memory_space<vmem>>, %arg10: memref<8x1xf32, #tpu.memory_space<vmem>>, %arg11: memref<2x8x256xf32, #tpu.memory_space<vmem>>) attributes {dimension_semantics = [], scalar_prefetch = 0 : i64, scratch_operands = 0 : i64, tpu.core_type = #tpu.core_type<tc>} {
    %c0 = arith.constant 0 : index
    %c0_0 = arith.constant 0 : index
    %c0_1 = arith.constant 0 : index
    %0 = vector.load %arg0[%c0, %c0_0, %c0_1] : memref<2x4x256xf32, #tpu.memory_space<vmem>>, vector<2x4x256xf32>
    %c0_2 = arith.constant 0 : index
    %c0_3 = arith.constant 0 : index
    %1 = vector.load %arg1[%c0_2, %c0_3] : memref<8x4xf32, #tpu.memory_space<vmem>>, vector<8x4xf32>
    %c0_4 = arith.constant 0 : index
    %c0_5 = arith.constant 0 : index
    %2 = vector.load %arg2[%c0_4, %c0_5] : memref<8x1xf32, #tpu.memory_space<vmem>>, vector<8x1xf32>
    %c0_6 = arith.constant 0 : index
    %c0_7 = arith.constant 0 : index
    %3 = vector.load %arg3[%c0_6, %c0_7] : memref<8x1xf32, #tpu.memory_space<vmem>>, vector<8x1xf32>
    %4 = vector.shape_cast %3 : vector<8x1xf32> to vector<1x8x1xf32>
    %c0_8 = arith.constant 0 : index
    %c0_9 = arith.constant 0 : index
    %5 = vector.load %arg4[%c0_8, %c0_9] : memref<8x1xf32, #tpu.memory_space<vmem>>, vector<8x1xf32>
    %6 = vector.shape_cast %5 : vector<8x1xf32> to vector<1x8x1xf32>
    %c0_10 = arith.constant 0 : index
    %c0_11 = arith.constant 0 : index
    %7 = vector.load %arg5[%c0_10, %c0_11] : memref<8x8xf32, #tpu.memory_space<vmem>>, vector<8x8xf32>
    %c0_12 = arith.constant 0 : index
    %c0_13 = arith.constant 0 : index
    %8 = vector.load %arg6[%c0_12, %c0_13] : memref<8x1xf32, #tpu.memory_space<vmem>>, vector<8x1xf32>
    %c0_14 = arith.constant 0 : index
    %c0_15 = arith.constant 0 : index
    %9 = vector.load %arg7[%c0_14, %c0_15] : memref<8x1xf32, #tpu.memory_space<vmem>>, vector<8x1xf32>
    %10 = vector.shape_cast %9 : vector<8x1xf32> to vector<1x8x1xf32>
    %c0_16 = arith.constant 0 : index
    %c0_17 = arith.constant 0 : index
    %11 = vector.load %arg8[%c0_16, %c0_17] : memref<8x1xf32, #tpu.memory_space<vmem>>, vector<8x1xf32>
    %12 = vector.shape_cast %11 : vector<8x1xf32> to vector<1x8x1xf32>
    %13 = vector.extract_strided_slice %1 {offsets = [0, 0], sizes = [8, 1], strides = [1, 1]} : vector<8x4xf32> to vector<8x1xf32>
    %14 = vector.shape_cast %13 : vector<8x1xf32> to vector<1x8x1xf32>
    %15 = vector.extract_strided_slice %0 {offsets = [0, 0, 0], sizes = [2, 1, 256], strides = [1, 1, 1]} : vector<2x4x256xf32> to vector<2x1x256xf32>
    %16 = vector.broadcast %14 : vector<1x8x1xf32> to vector<2x8x256xf32>
    %17 = vector.broadcast %15 : vector<2x1x256xf32> to vector<2x8x256xf32>
    %18 = arith.mulf %16, %17 : vector<2x8x256xf32>
    %19 = vector.extract_strided_slice %1 {offsets = [0, 1], sizes = [8, 1], strides = [1, 1]} : vector<8x4xf32> to vector<8x1xf32>
    %20 = vector.shape_cast %19 : vector<8x1xf32> to vector<1x8x1xf32>
    %21 = vector.extract_strided_slice %0 {offsets = [0, 1, 0], sizes = [2, 1, 256], strides = [1, 1, 1]} : vector<2x4x256xf32> to vector<2x1x256xf32>
    %22 = vector.broadcast %20 : vector<1x8x1xf32> to vector<2x8x256xf32>
    %23 = vector.broadcast %21 : vector<2x1x256xf32> to vector<2x8x256xf32>
    %24 = arith.mulf %22, %23 : vector<2x8x256xf32>
    %25 = arith.addf %18, %24 : vector<2x8x256xf32>
    %26 = vector.extract_strided_slice %1 {offsets = [0, 2], sizes = [8, 1], strides = [1, 1]} : vector<8x4xf32> to vector<8x1xf32>
    %27 = vector.shape_cast %26 : vector<8x1xf32> to vector<1x8x1xf32>
    %28 = vector.extract_strided_slice %0 {offsets = [0, 2, 0], sizes = [2, 1, 256], strides = [1, 1, 1]} : vector<2x4x256xf32> to vector<2x1x256xf32>
    %29 = vector.broadcast %27 : vector<1x8x1xf32> to vector<2x8x256xf32>
    %30 = vector.broadcast %28 : vector<2x1x256xf32> to vector<2x8x256xf32>
    %31 = arith.mulf %29, %30 : vector<2x8x256xf32>
    %32 = arith.addf %25, %31 : vector<2x8x256xf32>
    %33 = vector.extract_strided_slice %1 {offsets = [0, 3], sizes = [8, 1], strides = [1, 1]} : vector<8x4xf32> to vector<8x1xf32>
    %34 = vector.shape_cast %33 : vector<8x1xf32> to vector<1x8x1xf32>
    %35 = vector.extract_strided_slice %0 {offsets = [0, 3, 0], sizes = [2, 1, 256], strides = [1, 1, 1]} : vector<2x4x256xf32> to vector<2x1x256xf32>
    %36 = vector.broadcast %34 : vector<1x8x1xf32> to vector<2x8x256xf32>
    %37 = vector.broadcast %35 : vector<2x1x256xf32> to vector<2x8x256xf32>
    %38 = arith.mulf %36, %37 : vector<2x8x256xf32>
    %39 = arith.addf %32, %38 : vector<2x8x256xf32>
    %40 = vector.shape_cast %2 : vector<8x1xf32> to vector<1x8x1xf32>
    %41 = vector.broadcast %40 : vector<1x8x1xf32> to vector<2x8x256xf32>
    %42 = arith.addf %39, %41 : vector<2x8x256xf32>
    %cst = arith.constant dense<0.000000e+00> : vector<2x8xf32>
    %43 = vector.multi_reduction <add>, %42, %cst [2] : vector<2x8x256xf32> to vector<2x8xf32>
    %44 = vector.shape_cast %43 : vector<2x8xf32> to vector<2x8x1xf32>
    %cst_18 = arith.constant 3.906250e-03 : f32
    %45 = vector.broadcast %cst_18 : f32 to vector<2x8x1xf32>
    %46 = arith.mulf %44, %45 : vector<2x8x1xf32>
    %47 = arith.mulf %42, %42 : vector<2x8x256xf32>
    %cst_19 = arith.constant dense<0.000000e+00> : vector<2x8xf32>
    %48 = vector.multi_reduction <add>, %47, %cst_19 [2] : vector<2x8x256xf32> to vector<2x8xf32>
    %49 = vector.shape_cast %48 : vector<2x8xf32> to vector<2x8x1xf32>
    %cst_20 = arith.constant 3.906250e-03 : f32
    %50 = vector.broadcast %cst_20 : f32 to vector<2x8x1xf32>
    %51 = arith.mulf %49, %50 : vector<2x8x1xf32>
    %52 = arith.mulf %46, %46 : vector<2x8x1xf32>
    %53 = arith.subf %51, %52 : vector<2x8x1xf32>
    %cst_21 = arith.constant 0.000000e+00 : f32
    %54 = vector.broadcast %cst_21 : f32 to vector<2x8x1xf32>
    %55 = arith.maximumf %53, %54 : vector<2x8x1xf32>
    %cst_22 = arith.constant 9.99999974E-6 : f32
    %56 = vector.broadcast %cst_22 : f32 to vector<2x8x1xf32>
    %57 = arith.addf %55, %56 : vector<2x8x1xf32>
    %58 = arith.divf %55, %57 : vector<2x8x1xf32>
    %cst_23 = arith.constant dense<0.000000e+00> : vector<8x1xf32>
    %59 = vector.multi_reduction <add>, %58, %cst_23 [0] : vector<2x8x1xf32> to vector<8x1xf32>
    %60 = vector.shape_cast %59 : vector<8x1xf32> to vector<1x8x1xf32>
    %cst_24 = arith.constant 5.000000e-01 : f32
    %61 = vector.broadcast %cst_24 : f32 to vector<1x8x1xf32>
    %62 = arith.mulf %60, %61 : vector<1x8x1xf32>
    %cst_25 = arith.constant 9.99999974E-6 : f32
    %63 = vector.broadcast %cst_25 : f32 to vector<1x8x1xf32>
    %64 = arith.addf %62, %63 : vector<1x8x1xf32>
    %65 = math.rsqrt %64 : vector<1x8x1xf32>
    %cst_26 = arith.constant 9.99999974E-6 : f32
    %66 = vector.broadcast %cst_26 : f32 to vector<2x8x1xf32>
    %67 = arith.addf %55, %66 : vector<2x8x1xf32>
    %68 = math.rsqrt %67 : vector<2x8x1xf32>
    %69 = vector.broadcast %4 : vector<1x8x1xf32> to vector<2x8x1xf32>
    %70 = arith.mulf %69, %68 : vector<2x8x1xf32>
    %71 = vector.broadcast %65 : vector<1x8x1xf32> to vector<2x8x1xf32>
    %72 = arith.mulf %70, %71 : vector<2x8x1xf32>
    %73 = arith.mulf %46, %72 : vector<2x8x1xf32>
    %74 = vector.broadcast %6 : vector<1x8x1xf32> to vector<2x8x1xf32>
    %75 = arith.subf %74, %73 : vector<2x8x1xf32>
    %76 = vector.broadcast %72 : vector<2x8x1xf32> to vector<2x8x256xf32>
    %77 = arith.mulf %42, %76 : vector<2x8x256xf32>
    %78 = vector.broadcast %75 : vector<2x8x1xf32> to vector<2x8x256xf32>
    %79 = arith.addf %77, %78 : vector<2x8x256xf32>
    %cst_27 = arith.constant 0.000000e+00 : f32
    %80 = vector.broadcast %cst_27 : f32 to vector<2x8x256xf32>
    %81 = arith.maximumf %79, %80 : vector<2x8x256xf32>
    %82 = vector.extract_strided_slice %7 {offsets = [0, 0], sizes = [8, 1], strides = [1, 1]} : vector<8x8xf32> to vector<8x1xf32>
    %83 = vector.shape_cast %82 : vector<8x1xf32> to vector<1x8x1xf32>
    %84 = vector.extract_strided_slice %81 {offsets = [0, 0, 0], sizes = [2, 1, 256], strides = [1, 1, 1]} : vector<2x8x256xf32> to vector<2x1x256xf32>
    %85 = vector.broadcast %83 : vector<1x8x1xf32> to vector<2x8x256xf32>
    %86 = vector.broadcast %84 : vector<2x1x256xf32> to vector<2x8x256xf32>
    %87 = arith.mulf %85, %86 : vector<2x8x256xf32>
    %88 = vector.extract_strided_slice %7 {offsets = [0, 1], sizes = [8, 1], strides = [1, 1]} : vector<8x8xf32> to vector<8x1xf32>
    %89 = vector.shape_cast %88 : vector<8x1xf32> to vector<1x8x1xf32>
    %90 = vector.extract_strided_slice %81 {offsets = [0, 1, 0], sizes = [2, 1, 256], strides = [1, 1, 1]} : vector<2x8x256xf32> to vector<2x1x256xf32>
    %91 = vector.broadcast %89 : vector<1x8x1xf32> to vector<2x8x256xf32>
    %92 = vector.broadcast %90 : vector<2x1x256xf32> to vector<2x8x256xf32>
    %93 = arith.mulf %91, %92 : vector<2x8x256xf32>
    %94 = arith.addf %87, %93 : vector<2x8x256xf32>
    %95 = vector.extract_strided_slice %7 {offsets = [0, 2], sizes = [8, 1], strides = [1, 1]} : vector<8x8xf32> to vector<8x1xf32>
    %96 = vector.shape_cast %95 : vector<8x1xf32> to vector<1x8x1xf32>
    %97 = vector.extract_strided_slice %81 {offsets = [0, 2, 0], sizes = [2, 1, 256], strides = [1, 1, 1]} : vector<2x8x256xf32> to vector<2x1x256xf32>
    %98 = vector.broadcast %96 : vector<1x8x1xf32> to vector<2x8x256xf32>
    %99 = vector.broadcast %97 : vector<2x1x256xf32> to vector<2x8x256xf32>
    %100 = arith.mulf %98, %99 : vector<2x8x256xf32>
    %101 = arith.addf %94, %100 : vector<2x8x256xf32>
    %102 = vector.extract_strided_slice %7 {offsets = [0, 3], sizes = [8, 1], strides = [1, 1]} : vector<8x8xf32> to vector<8x1xf32>
    %103 = vector.shape_cast %102 : vector<8x1xf32> to vector<1x8x1xf32>
    %104 = vector.extract_strided_slice %81 {offsets = [0, 3, 0], sizes = [2, 1, 256], strides = [1, 1, 1]} : vector<2x8x256xf32> to vector<2x1x256xf32>
    %105 = vector.broadcast %103 : vector<1x8x1xf32> to vector<2x8x256xf32>
    %106 = vector.broadcast %104 : vector<2x1x256xf32> to vector<2x8x256xf32>
    %107 = arith.mulf %105, %106 : vector<2x8x256xf32>
    %108 = arith.addf %101, %107 : vector<2x8x256xf32>
    %109 = vector.extract_strided_slice %7 {offsets = [0, 4], sizes = [8, 1], strides = [1, 1]} : vector<8x8xf32> to vector<8x1xf32>
    %110 = vector.shape_cast %109 : vector<8x1xf32> to vector<1x8x1xf32>
    %111 = vector.extract_strided_slice %81 {offsets = [0, 4, 0], sizes = [2, 1, 256], strides = [1, 1, 1]} : vector<2x8x256xf32> to vector<2x1x256xf32>
    %112 = vector.broadcast %110 : vector<1x8x1xf32> to vector<2x8x256xf32>
    %113 = vector.broadcast %111 : vector<2x1x256xf32> to vector<2x8x256xf32>
    %114 = arith.mulf %112, %113 : vector<2x8x256xf32>
    %115 = arith.addf %108, %114 : vector<2x8x256xf32>
    %116 = vector.extract_strided_slice %7 {offsets = [0, 5], sizes = [8, 1], strides = [1, 1]} : vector<8x8xf32> to vector<8x1xf32>
    %117 = vector.shape_cast %116 : vector<8x1xf32> to vector<1x8x1xf32>
    %118 = vector.extract_strided_slice %81 {offsets = [0, 5, 0], sizes = [2, 1, 256], strides = [1, 1, 1]} : vector<2x8x256xf32> to vector<2x1x256xf32>
    %119 = vector.broadcast %117 : vector<1x8x1xf32> to vector<2x8x256xf32>
    %120 = vector.broadcast %118 : vector<2x1x256xf32> to vector<2x8x256xf32>
    %121 = arith.mulf %119, %120 : vector<2x8x256xf32>
    %122 = arith.addf %115, %121 : vector<2x8x256xf32>
    %123 = vector.extract_strided_slice %7 {offsets = [0, 6], sizes = [8, 1], strides = [1, 1]} : vector<8x8xf32> to vector<8x1xf32>
    %124 = vector.shape_cast %123 : vector<8x1xf32> to vector<1x8x1xf32>
    %125 = vector.extract_strided_slice %81 {offsets = [0, 6, 0], sizes = [2, 1, 256], strides = [1, 1, 1]} : vector<2x8x256xf32> to vector<2x1x256xf32>
    %126 = vector.broadcast %124 : vector<1x8x1xf32> to vector<2x8x256xf32>
    %127 = vector.broadcast %125 : vector<2x1x256xf32> to vector<2x8x256xf32>
    %128 = arith.mulf %126, %127 : vector<2x8x256xf32>
    %129 = arith.addf %122, %128 : vector<2x8x256xf32>
    %130 = vector.extract_strided_slice %7 {offsets = [0, 7], sizes = [8, 1], strides = [1, 1]} : vector<8x8xf32> to vector<8x1xf32>
    %131 = vector.shape_cast %130 : vector<8x1xf32> to vector<1x8x1xf32>
    %132 = vector.extract_strided_slice %81 {offsets = [0, 7, 0], sizes = [2, 1, 256], strides = [1, 1, 1]} : vector<2x8x256xf32> to vector<2x1x256xf32>
    %133 = vector.broadcast %131 : vector<1x8x1xf32> to vector<2x8x256xf32>
    %134 = vector.broadcast %132 : vector<2x1x256xf32> to vector<2x8x256xf32>
    %135 = arith.mulf %133, %134 : vector<2x8x256xf32>
    %136 = arith.addf %129, %135 : vector<2x8x256xf32>
    %137 = vector.shape_cast %8 : vector<8x1xf32> to vector<1x8x1xf32>
    %138 = vector.broadcast %137 : vector<1x8x1xf32> to vector<2x8x256xf32>
    %139 = arith.addf %136, %138 : vector<2x8x256xf32>
    %cst_28 = arith.constant dense<0.000000e+00> : vector<2x8xf32>
    %140 = vector.multi_reduction <add>, %139, %cst_28 [2] : vector<2x8x256xf32> to vector<2x8xf32>
    %141 = vector.shape_cast %140 : vector<2x8xf32> to vector<2x8x1xf32>
    %cst_29 = arith.constant 3.906250e-03 : f32
    %142 = vector.broadcast %cst_29 : f32 to vector<2x8x1xf32>
    %143 = arith.mulf %141, %142 : vector<2x8x1xf32>
    %144 = arith.mulf %139, %139 : vector<2x8x256xf32>
    %cst_30 = arith.constant dense<0.000000e+00> : vector<2x8xf32>
    %145 = vector.multi_reduction <add>, %144, %cst_30 [2] : vector<2x8x256xf32> to vector<2x8xf32>
    %146 = vector.shape_cast %145 : vector<2x8xf32> to vector<2x8x1xf32>
    %cst_31 = arith.constant 3.906250e-03 : f32
    %147 = vector.broadcast %cst_31 : f32 to vector<2x8x1xf32>
    %148 = arith.mulf %146, %147 : vector<2x8x1xf32>
    %149 = arith.mulf %143, %143 : vector<2x8x1xf32>
    %150 = arith.subf %148, %149 : vector<2x8x1xf32>
    %cst_32 = arith.constant 0.000000e+00 : f32
    %151 = vector.broadcast %cst_32 : f32 to vector<2x8x1xf32>
    %152 = arith.maximumf %150, %151 : vector<2x8x1xf32>
    %cst_33 = arith.constant 9.99999974E-6 : f32
    %153 = vector.broadcast %cst_33 : f32 to vector<2x8x1xf32>
    %154 = arith.addf %152, %153 : vector<2x8x1xf32>
    %155 = arith.divf %152, %154 : vector<2x8x1xf32>
    %cst_34 = arith.constant dense<0.000000e+00> : vector<8x1xf32>
    %156 = vector.multi_reduction <add>, %155, %cst_34 [0] : vector<2x8x1xf32> to vector<8x1xf32>
    %157 = vector.shape_cast %156 : vector<8x1xf32> to vector<1x8x1xf32>
    %cst_35 = arith.constant 5.000000e-01 : f32
    %158 = vector.broadcast %cst_35 : f32 to vector<1x8x1xf32>
    %159 = arith.mulf %157, %158 : vector<1x8x1xf32>
    %cst_36 = arith.constant 9.99999974E-6 : f32
    %160 = vector.broadcast %cst_36 : f32 to vector<1x8x1xf32>
    %161 = arith.addf %159, %160 : vector<1x8x1xf32>
    %162 = math.rsqrt %161 : vector<1x8x1xf32>
    %cst_37 = arith.constant 9.99999974E-6 : f32
    %163 = vector.broadcast %cst_37 : f32 to vector<2x8x1xf32>
    %164 = arith.addf %152, %163 : vector<2x8x1xf32>
    %165 = math.rsqrt %164 : vector<2x8x1xf32>
    %166 = vector.broadcast %10 : vector<1x8x1xf32> to vector<2x8x1xf32>
    %167 = arith.mulf %166, %165 : vector<2x8x1xf32>
    %168 = vector.broadcast %162 : vector<1x8x1xf32> to vector<2x8x1xf32>
    %169 = arith.mulf %167, %168 : vector<2x8x1xf32>
    %170 = arith.mulf %143, %169 : vector<2x8x1xf32>
    %171 = vector.broadcast %12 : vector<1x8x1xf32> to vector<2x8x1xf32>
    %172 = arith.subf %171, %170 : vector<2x8x1xf32>
    %c0_38 = arith.constant 0 : index
    %c0_39 = arith.constant 0 : index
    %173 = vector.load %arg9[%c0_38, %c0_39] : memref<8x4xf32, #tpu.memory_space<vmem>>, vector<8x4xf32>
    %c0_40 = arith.constant 0 : index
    %c0_41 = arith.constant 0 : index
    %174 = vector.load %arg10[%c0_40, %c0_41] : memref<8x1xf32, #tpu.memory_space<vmem>>, vector<8x1xf32>
    %175 = vector.extract_strided_slice %173 {offsets = [0, 0], sizes = [8, 1], strides = [1, 1]} : vector<8x4xf32> to vector<8x1xf32>
    %176 = vector.shape_cast %175 : vector<8x1xf32> to vector<1x8x1xf32>
    %177 = vector.extract_strided_slice %0 {offsets = [0, 0, 0], sizes = [2, 1, 256], strides = [1, 1, 1]} : vector<2x4x256xf32> to vector<2x1x256xf32>
    %178 = vector.broadcast %176 : vector<1x8x1xf32> to vector<2x8x256xf32>
    %179 = vector.broadcast %177 : vector<2x1x256xf32> to vector<2x8x256xf32>
    %180 = arith.mulf %178, %179 : vector<2x8x256xf32>
    %181 = vector.extract_strided_slice %173 {offsets = [0, 1], sizes = [8, 1], strides = [1, 1]} : vector<8x4xf32> to vector<8x1xf32>
    %182 = vector.shape_cast %181 : vector<8x1xf32> to vector<1x8x1xf32>
    %183 = vector.extract_strided_slice %0 {offsets = [0, 1, 0], sizes = [2, 1, 256], strides = [1, 1, 1]} : vector<2x4x256xf32> to vector<2x1x256xf32>
    %184 = vector.broadcast %182 : vector<1x8x1xf32> to vector<2x8x256xf32>
    %185 = vector.broadcast %183 : vector<2x1x256xf32> to vector<2x8x256xf32>
    %186 = arith.mulf %184, %185 : vector<2x8x256xf32>
    %187 = arith.addf %180, %186 : vector<2x8x256xf32>
    %188 = vector.extract_strided_slice %173 {offsets = [0, 2], sizes = [8, 1], strides = [1, 1]} : vector<8x4xf32> to vector<8x1xf32>
    %189 = vector.shape_cast %188 : vector<8x1xf32> to vector<1x8x1xf32>
    %190 = vector.extract_strided_slice %0 {offsets = [0, 2, 0], sizes = [2, 1, 256], strides = [1, 1, 1]} : vector<2x4x256xf32> to vector<2x1x256xf32>
    %191 = vector.broadcast %189 : vector<1x8x1xf32> to vector<2x8x256xf32>
    %192 = vector.broadcast %190 : vector<2x1x256xf32> to vector<2x8x256xf32>
    %193 = arith.mulf %191, %192 : vector<2x8x256xf32>
    %194 = arith.addf %187, %193 : vector<2x8x256xf32>
    %195 = vector.extract_strided_slice %173 {offsets = [0, 3], sizes = [8, 1], strides = [1, 1]} : vector<8x4xf32> to vector<8x1xf32>
    %196 = vector.shape_cast %195 : vector<8x1xf32> to vector<1x8x1xf32>
    %197 = vector.extract_strided_slice %0 {offsets = [0, 3, 0], sizes = [2, 1, 256], strides = [1, 1, 1]} : vector<2x4x256xf32> to vector<2x1x256xf32>
    %198 = vector.broadcast %196 : vector<1x8x1xf32> to vector<2x8x256xf32>
    %199 = vector.broadcast %197 : vector<2x1x256xf32> to vector<2x8x256xf32>
    %200 = arith.mulf %198, %199 : vector<2x8x256xf32>
    %201 = arith.addf %194, %200 : vector<2x8x256xf32>
    %202 = vector.shape_cast %174 : vector<8x1xf32> to vector<1x8x1xf32>
    %203 = vector.broadcast %202 : vector<1x8x1xf32> to vector<2x8x256xf32>
    %204 = arith.addf %201, %203 : vector<2x8x256xf32>
    %205 = vector.broadcast %169 : vector<2x8x1xf32> to vector<2x8x256xf32>
    %206 = arith.mulf %139, %205 : vector<2x8x256xf32>
    %207 = vector.broadcast %172 : vector<2x8x1xf32> to vector<2x8x256xf32>
    %208 = arith.addf %206, %207 : vector<2x8x256xf32>
    %209 = arith.addf %208, %204 : vector<2x8x256xf32>
    %cst_42 = arith.constant 0.000000e+00 : f32
    %210 = vector.broadcast %cst_42 : f32 to vector<2x8x256xf32>
    %211 = arith.maximumf %209, %210 : vector<2x8x256xf32>
    %c0_43 = arith.constant 0 : index
    %c0_44 = arith.constant 0 : index
    %c0_45 = arith.constant 0 : index
    %212 = vector.load %arg11[%c0_43, %c0_44, %c0_45] : memref<2x8x256xf32, #tpu.memory_space<vmem>>, vector<2x8x256xf32>
    tpu.vector_store %arg11[%c0_43, %c0_44, %c0_45], %211 {strides = array<i32>} : memref<2x8x256xf32, #tpu.memory_space<vmem>>, vector<2x8x256xf32>,
    return
  }
}

</mosaic_0001>

<bundles_post_ra>
// kernel: tpu_custom_call.1
= control target key start
LH: loop header
LB: loop body
LE: loop exit
PB: predicated region body
PF: predicated region fallthrough
CT: control target
= control target key end

     0   :  { %v710_v1 = vmov 0   ;;  %v711_v2 = vmov 2   ;;  %s1045_s0 = inlined_call_operand.vmem [shape: f32[2,4,256], index: 0, kind: input, shape index: {}]   ;;  %s1046_s1 = inlined_call_operand.vmem [shape: f32[8,4], index: 1, kind: input, shape index: {}]   ;;  %s1047_s2 = inlined_call_operand.vmem [shape: f32[8,1], index: 2, kind: input, shape index: {}]   ;;  %s1048_s3 = inlined_call_operand.vmem [shape: f32[8,1], index: 3, kind: input, shape index: {}]   ;;  %s1049_s4 = inlined_call_operand.vmem [shape: f32[8,1], index: 4, kind: input, shape index: {}]   ;;  %s1050_s5 = inlined_call_operand.vmem [shape: f32[8,8], index: 5, kind: input, shape index: {}]   ;;  %s1051_s6 = inlined_call_operand.vmem [shape: f32[8,1], index: 6, kind: input, shape index: {}]   ;;  %s1052_s7 = inlined_call_operand.vmem [shape: f32[8,1], index: 7, kind: input, shape index: {}]   ;;  %s1053_s8 = inlined_call_operand.vmem [shape: f32[8,1], index: 8, kind: input, shape index: {}]   ;;  %s1054_s9 = inlined_call_operand.vmem [shape: f32[8,4], index: 9, kind: input, shape index: {}]   ;;  %s1055_s10 = inlined_call_operand.vmem [shape: f32[8,1], index: 10, kind: input, shape index: {}]   ;;  %s1056_s11 = inlined_call_operand.hbm [shape: f32[2,8,256], index: 11, kind: output, shape index: {}]  }
   0x1   :  { %v41_v0 = vld [vmem:[%s1046_s1] sm:$0xff]  ;;  %642 = vset.pattern.permute.xlu0 %v710_v1  ;;  %644 = vset.pattern.permute.xlu1 %v711_v2 }
   0x2   :  { %v42_v3 = vld [vmem:[%s1047_s2] sm:$0xff] }
   0x3   :  { %16 = vsyncpa [#allocation3], 0  ;;  %51 = vperm.xlu0 %642, %v41_v0   ;;  %97 = vperm.xlu1 %644, %v41_v0   ;;  %v712_v4 = vmov 1   ;;  %v713_v5 = vmov 3   ;;  %v39_v6 = vld [vmem:[%s1045_s0] sm:$0xff]  ;;  %v40_v7 = vld [vmem:[%s1045_s0 + $0x8] sm:$0xff] }
   0x4   :  { %646 = vset.pattern.permute.xlu2 %v710_v1  ;;  %v56_v9 = vperm.slane %v39_v6, 0  ;;  %v57_v10 = vperm.slane %v39_v6, 4  ;;  %v58_v11 = vperm.slane %v40_v7, 0  ;;  %v59_v12 = vperm.slane %v40_v7, 4  ;;  %s619_s15 = sshll.u32 %s1056_s11, 4  ;;  %s719_s16 = smov 256   ;;  %s620_s15 = int_to_ptr.hbm [resolvable:$true] %s619_s15 }
   0x5   :  { %146 = vperm.xlu2 %646, %v42_v3   ;;  %v100_v14 = vperm.slane %v39_v6, 2  ;;  %v101_v15 = vperm.slane %v39_v6, 6  ;;  %v102_v16 = vperm.slane %v40_v7, 2  ;;  %v103_v17 = vperm.slane %v40_v7, 6  ;;  %s720_s17 = smov 16  }
   0x6   :  { %v76_v18 = vperm.slane %v39_v6, 1  ;;  %v77_v19 = vperm.slane %v39_v6, 5  ;;  %v78_v20 = vperm.slane %v40_v7, 1  ;;  %v79_v21 = vperm.slane %v40_v7, 5 }
   0x7   :  { %v124_v22 = vperm.slane %v39_v6, 3  ;;  %v125_v23 = vperm.slane %v39_v6, 7  ;;  %v126_v24 = vperm.slane %v40_v7, 3  ;;  %v127_v25 = vperm.slane %v40_v7, 7 }
   0x8   :  { %v801_v26 = vperm.slane %v56_v9, 0  ;;  %v803_v27 = vperm.slane %v57_v10, 0  ;;  %v805_v28 = vperm.slane %v58_v11, 0  ;;  %v807_v29 = vperm.slane %v59_v12, 0 }
   0x9   :  { %v809_v30 = vperm.slane %v100_v14, 2  ;;  %v811_v31 = vperm.slane %v101_v15, 2  ;;  %v813_v32 = vperm.slane %v102_v16, 2  ;;  %v815_v33 = vperm.slane %v103_v17, 2 }
   0xa   :  { %v817_v34 = vperm.slane %v76_v18, 1  ;;  %v819_v35 = vperm.slane %v77_v19, 1  ;;  %v821_v36 = vperm.slane %v78_v20, 1  ;;  %v823_v37 = vperm.slane %v79_v21, 1 }
   0xb   :  { %643 = vset.pattern.permute.xlu0 %v712_v4  ;;  %645 = vset.pattern.permute.xlu1 %v713_v5  ;;  %v825_v38 = vperm.slane %v124_v22, 3  ;;  %v827_v39 = vperm.slane %v125_v23, 3  ;;  %v829_v40 = vperm.slane %v126_v24, 3  ;;  %v831_v41 = vperm.slane %v127_v25, 3 }
   0xc   :  { %73 = vperm.xlu0 %643, %v41_v0   ;;  %121 = vperm.xlu1 %645, %v41_v0  }
   0xd   :  { %648 = vset.pattern.permute.xlu2 %v712_v4 }
  0x14   :  { %647 = vset.pattern.permute.xlu1 %v710_v1  ;;  %651 = vset.pattern.permute.xlu0 %v710_v1 }
  0x75   :  { %v52_v8 = vpop.permute.xlu0 %51  ;;  %v98_v13 = vpop.permute.xlu1 %97 }
  0x76   :  { %v68_v42 = vmul.f32 %v801_v26, %v52_v8  ;;  %v69_v43 = vmul.f32 %v803_v27, %v52_v8  ;;  %v70_v44 = vmul.f32 %v805_v28, %v52_v8  ;;  %v71_v45 = vmul.f32 %v807_v29, %v52_v8  ;;  %v147_v8 = vpop.permute.xlu2 %146 }
  0x77   :  { %v112_v46 = vmul.f32 %v809_v30, %v98_v13  ;;  %v113_v47 = vmul.f32 %v811_v31, %v98_v13  ;;  %v114_v48 = vmul.f32 %v813_v32, %v98_v13  ;;  %v115_v49 = vmul.f32 %v815_v33, %v98_v13 }
  0x7e   :  { %v74_v50 = vpop.permute.xlu0 %73  ;;  %v122_v51 = vpop.permute.xlu1 %121 }
  0x7f   :  { %v88_v52 = vmul.f32 %v817_v34, %v74_v50  ;;  %v89_v53 = vmul.f32 %v819_v35, %v74_v50  ;;  %v90_v54 = vmul.f32 %v821_v36, %v74_v50  ;;  %v91_v55 = vmul.f32 %v823_v37, %v74_v50 }
  0x80   :  { %v136_v56 = vmul.f32 %v825_v38, %v122_v51  ;;  %v137_v57 = vmul.f32 %v827_v39, %v122_v51  ;;  %v138_v58 = vmul.f32 %v829_v40, %v122_v51  ;;  %v139_v59 = vmul.f32 %v831_v41, %v122_v51 }
  0x81   :  { %v92_v60 = vadd.f32 %v88_v52, %v68_v42  ;;  %v93_v61 = vadd.f32 %v89_v53, %v69_v43  ;;  %v94_v62 = vadd.f32 %v90_v54, %v70_v44  ;;  %v95_v63 = vadd.f32 %v91_v55, %v71_v45 }
  0x83   :  { %v116_v0 = vadd.f32 %v112_v46, %v92_v60  ;;  %v117_v3 = vadd.f32 %v113_v47, %v93_v61  ;;  %v118_v6 = vadd.f32 %v114_v48, %v94_v62  ;;  %v119_v7 = vadd.f32 %v115_v49, %v95_v63 }
  0x85   :  { %v140_v9 = vadd.f32 %v136_v56, %v116_v0  ;;  %v141_v10 = vadd.f32 %v137_v57, %v117_v3  ;;  %v142_v11 = vadd.f32 %v138_v58, %v118_v6  ;;  %v143_v12 = vadd.f32 %v139_v59, %v119_v7  ;;  %v884_v59 = vld [vmem:[%s1050_s5] sm:$0xff] }
  0x87   :  { %v849_v13 = vadd.f32 %v147_v8, %v140_v9  ;;  %v851_v14 = vadd.f32 %v147_v8, %v141_v10  ;;  %v853_v15 = vadd.f32 %v147_v8, %v142_v11  ;;  %v855_v16 = vadd.f32 %v147_v8, %v143_v12 }
  0x89   :  { %v156_v17 = vadd.f32 %v855_v16, %v853_v15  ;;  %v153_v18 = vadd.f32 %v851_v14, %v849_v13  ;;  %v161_v19 = vmul.f32 %v849_v13, %v849_v13  ;;  %v162_v20 = vmul.f32 %v851_v14, %v851_v14 }
  0x8a   :  { %v163_v22 = vmul.f32 %v853_v15, %v853_v15  ;;  %v164_v23 = vmul.f32 %v855_v16, %v855_v16 }
  0x8b   :  { %157 = vadd.xlane.f32.xlu1 %v156_v17  ;;  %154 = vadd.xlane.f32.xlu2 %v153_v18  ;;  %v165_v21 = vadd.f32 %v162_v20, %v161_v19 }
  0x8c   :  { %v168_v24 = vadd.f32 %v164_v23, %v163_v22 }
  0x8d   :  { %166 = vadd.xlane.f32.xlu0 %v165_v21 }
  0x93   :  { %169 = vadd.xlane.f32.xlu2 %v168_v24 }
  0xa4   :  { %286 = vperm.xlu1 %647, %v884_v59  }
  0xab   :  { %298 = vperm.xlu2 %648, %v884_v59  }
  0xb3   :  { %649 = vset.pattern.permute.xlu2 %v710_v1 }
  0xfe   :  { %v155_v25 = vpop.xlane.xlu2 %154  ;;  %v158_v44 = vpop.xlane.xlu1 %157 }
  0xff   :  { %v869_v42 = vmul.f32 0.00390625, %v155_v25  ;;  %v873_v48 = vmul.f32 0.00390625, %v158_v44 }
 0x100   :  { %v167_v43 = vpop.xlane.xlu0 %166 }
 0x101   :  { %v173_v45 = vmul.f32 %v869_v42, %v869_v42  ;;  %v171_v46 = vmul.f32 0.00390625, %v167_v43  ;;  %v174_v53 = vmul.f32 %v873_v48, %v873_v48 }
 0x103   :  { %v175_v47 = vsub.f32 %v171_v46, %v173_v45 }
 0x105   :  { %v177_v49 = vmax.f32 %v175_v47, 0.0 }
 0x106   :  { %v170_v50 = vpop.xlane.xlu2 %169 }
 0x107   :  { %v875_v51 = vadd.f32 1e-05, %v177_v49  ;;  %v172_v52 = vmul.f32 0.00390625, %v170_v50 }
 0x109   :  { %664 = vrcp.f32 %v875_v51  ;;  %v176_v54 = vsub.f32 %v172_v52, %v174_v53  ;;  %v192_v3 = vand.u32 2147483648, %v875_v51  ;;  %vm186_vm1 = vweird.f32 %v875_v51 }
 0x10a   :  { %v190_v6 = vand.u32 2147483647, %v875_v51 }
 0x10b   :  { %v178_v55 = vmax.f32 %v176_v54, 0.0  ;;  %v193_v12 = vor.u32 1.1754944e-38, %v192_v3 }
 0x10c   :  { %vm191_vm4 = vcmp.eq.f32.partialorder %v190_v6, 8.507059e+37 }
 0x10d   :  { %v180_v56 = vadd.f32 1e-05, %v178_v55 }
 0x10f   :  { %v665_v57 = vpop.eup %664  ;;  %666 = vrcp.f32 %v180_v56  ;;  %v207_v8 = vand.u32 2147483648, %v180_v56  ;;  %v205_v11 = vand.u32 2147483647, %v180_v56  ;;  %vm201_vm5 = vweird.f32 %v180_v56 }
 0x110   :  { %v182_v58 = vmul.f32 %v665_v57, %v875_v51  ;;  %vm187_vm0 = vweird.f32 %v665_v57  ;;  %668 = vrsqrt.f32 %v875_v51 }
 0x111   :  { %670 = vrsqrt.f32 %v180_v56  ;;  %vm188_vm2 = vmor %vm186_vm1, %vm187_vm0  ;;  %v208_v20 = vor.u32 1.1754944e-38, %v207_v8  ;;  %vm206_vm7 = vcmp.eq.f32.partialorder %v205_v11, 8.507059e+37 }
 0x112   :  { %v183_v60 = vsub.f32 1.0, %v182_v58 }
 0x114   :  { %v184_v61 = vmul.f32 %v665_v57, %v183_v60 }
 0x115   :  { %v667_v62 = vpop.eup %666 }
 0x116   :  { %v185_v63 = vadd.f32 %v665_v57, %v184_v61  ;;  %v197_v0 = vmul.f32 %v667_v62, %v180_v56  ;;  %vm202_vm3 = vweird.f32 %v667_v62  ;;  %v669_v18 = vpop.eup %668 }
 0x117   :  { %vm203_vm6 = vmor %vm201_vm5, %vm202_vm3  ;;  %v671_v21 = vpop.eup %670  ;;  %v225_v44 = vmul.f32 %v669_v18, %v875_v51  ;;  %vm231_vm8 = vweird.f32 %v669_v18  ;;  %v44_v51 = vld [vmem:[%s1049_s4] sm:$0xff] }
 0x118   :  { %v198_v7 = vsub.f32 1.0, %v197_v0  ;;  %v189_v9 = vsel %vm188_vm2, %v665_v57, %v185_v63  ;;  %v235_v43 = vmul.f32 %v671_v21, %v180_v56  ;;  %vm241_vm9 = vweird.f32 %v671_v21  ;;  %vm232_vm10 = vmor %vm186_vm1, %vm231_vm8  ;;  %v43_v0 = vld [vmem:[%s1048_s3] sm:$0xff] }
 0x119   :  { %v194_v19 = vsel %vm191_vm4, %v193_v12, %v189_v9  ;;  %v226_v50 = vmul.f32 %v669_v18, %v225_v44  ;;  %vm242_vm11 = vmor %vm201_vm5, %vm241_vm9 }
 0x11a   :  { %v199_v10 = vmul.f32 %v667_v62, %v198_v7  ;;  %v195_v24 = vmul.f32 %v194_v19, %v177_v49  ;;  %v236_v47 = vmul.f32 %v671_v21, %v235_v43 }
 0x11b   :  { %v227_v54 = vmul.f32 0.5, %v226_v50 }
 0x11c   :  { %v200_v17 = vadd.f32 %v667_v62, %v199_v10  ;;  %v237_v53 = vmul.f32 0.5, %v236_v47 }
 0x11d   :  { %v228_v58 = vsub.f32 1.5, %v227_v54 }
 0x11e   :  { %v204_v22 = vsel %vm203_vm6, %v667_v62, %v200_v17  ;;  %v238_v57 = vsub.f32 1.5, %v237_v53 }
 0x11f   :  { %v209_v23 = vsel %vm206_vm7, %v208_v20, %v204_v22  ;;  %v229_v49 = vmul.f32 %v669_v18, %v228_v58  ;;  %v715_v22 = vmov 4  }
 0x120   :  { %v210_v25 = vmul.f32 %v209_v23, %v178_v55  ;;  %v239_v63 = vmul.f32 %v671_v21, %v238_v57  ;;  %v46_v23 = vld [vmem:[%s1051_s6] sm:$0xff] }
 0x121   :  { %v233_v7 = vsel %vm232_vm10, %v669_v18, %v229_v49 }
 0x122   :  { %v211_v45 = vadd.f32 %v210_v25, %v195_v24  ;;  %v243_v6 = vsel %vm242_vm11, %v671_v21, %v239_v63  ;;  %v244_v10 = vmul.f32 %v233_v7, %v43_v0  ;;  %v714_v21 = vmov 6   ;;  %v299_v24 = vpop.permute.xlu2 %298 }
 0x123   :  { %v245_v9 = vmul.f32 %v243_v6, %v43_v0 }
 0x124   :  { %v212_v46 = vmul.f32 0.5, %v211_v45 }
 0x126   :  { %v213_v52 = vadd.f32 1e-05, %v212_v46 }
 0x128   :  { %672 = vrsqrt.f32 %v213_v52  ;;  %vm220_vm13 = vweird.f32 %v213_v52 }
 0x12e   :  { %v673_v60 = vpop.eup %672 }
 0x12f   :  { %v215_v61 = vmul.f32 %v673_v60, %v213_v52  ;;  %vm221_vm12 = vweird.f32 %v673_v60 }
 0x130   :  { %vm222_vm14 = vmor %vm220_vm13, %vm221_vm12 }
 0x131   :  { %v216_v62 = vmul.f32 %v673_v60, %v215_v61 }
 0x133   :  { %v217_v55 = vmul.f32 0.5, %v216_v62 }
 0x135   :  { %v218_v3 = vsub.f32 1.5, %v217_v55 }
 0x137   :  { %v219_v8 = vmul.f32 %v673_v60, %v218_v3 }
 0x139   :  { %v223_v11 = vsel %vm222_vm14, %v673_v60, %v219_v8 }
 0x13a   :  { %v247_v12 = vmul.f32 %v245_v9, %v223_v11  ;;  %v246_v17 = vmul.f32 %v244_v10, %v223_v11 }
 0x13c   :  { %259 = vperm.xlu1 %647, %v247_v12   ;;  %254 = vperm.xlu2 %649, %v246_v17   ;;  %v248_v56 = vmul.f32 %v246_v17, %v869_v42  ;;  %v249_v20 = vmul.f32 %v247_v12, %v873_v48  ;;  %v716_v42 = vmov 5   ;;  %v717_v48 = vmov 7  }
 0x13e   :  { %v250_v19 = vsub.f32 %v44_v51, %v248_v56  ;;  %v251_v18 = vsub.f32 %v44_v51, %v249_v20 }
 0x140   :  { %268 = vperm.xlu0 %651, %v250_v19  }
 0x144   :  { %650 = vset.pattern.permute.xlu1 %v711_v2  ;;  %273 = vperm.xlu2 %649, %v251_v18  }
 0x145   :  { %314 = vperm.xlu1 %650, %v884_v59  }
 0x148   :  { %655 = vset.pattern.permute.xlu0 %v714_v21 }
 0x149   :  { %378 = vperm.xlu0 %655, %v884_v59  }
 0x14c   :  { %652 = vset.pattern.permute.xlu2 %v713_v5 }
 0x14d   :  { %653 = vset.pattern.permute.xlu1 %v715_v22  ;;  %330 = vperm.xlu2 %652, %v884_v59  }
 0x14e   :  { %346 = vperm.xlu1 %653, %v884_v59  }
 0x151   :  { %658 = vset.pattern.permute.xlu0 %v712_v4  ;;  %v287_v4 = vpop.permute.xlu1 %286 }
 0x155   :  { %654 = vset.pattern.permute.xlu2 %v716_v42 }
 0x156   :  { %656 = vset.pattern.permute.xlu1 %v717_v48  ;;  %362 = vperm.xlu2 %654, %v884_v59  }
 0x157   :  { %394 = vperm.xlu1 %656, %v884_v59  }
 0x15e   :  { %657 = vset.pattern.permute.xlu2 %v710_v1 }
 0x15f   :  { %411 = vperm.xlu2 %657, %v46_v23   ;;  %659 = vset.pattern.permute.xlu1 %v711_v2 }
 0x196   :  { %v255_v25 = vpop.permute.xlu2 %254 }
 0x197   :  { %v262_v59 = vmul.f32 %v255_v25, %v849_v13  ;;  %v263_v47 = vmul.f32 %v255_v25, %v851_v14 }
 0x19e   :  { %v274_v43 = vpop.permute.xlu2 %273 }
 0x1a7   :  { %v926_v53 = vpop.permute.xlu2 %330 }
 0x1ae   :  { %v260_v44 = vpop.permute.xlu1 %259 }
 0x1af   :  { %v264_v45 = vmul.f32 %v260_v44, %v853_v15  ;;  %v265_v46 = vmul.f32 %v260_v44, %v855_v16 }
 0x1b0   :  { %v363_v18 = vpop.permute.xlu2 %362 }
 0x1b1   :  { %v278_v50 = vadd.f32 %v274_v43, %v264_v45  ;;  %v279_v52 = vadd.f32 %v274_v43, %v265_v46 }
 0x1b2   :  { %v269_v54 = vpop.permute.xlu0 %268 }
 0x1b3   :  { %v928_v57 = vmax.f32 %v278_v50, 0.0  ;;  %v930_v2 = vmax.f32 %v279_v52, 0.0  ;;  %v276_v58 = vadd.f32 %v269_v54, %v262_v59  ;;  %v277_v60 = vadd.f32 %v269_v54, %v263_v47 }
 0x1b5   :  { %v932_v61 = vmax.f32 %v276_v58, 0.0  ;;  %v934_v15 = vmax.f32 %v277_v60, 0.0  ;;  %v291_v16 = vperm.slane %v928_v57, 0  ;;  %v292_v13 = vperm.slane %v930_v2, 0 }
 0x1b6   :  { %v335_v14 = vperm.slane %v928_v57, 3  ;;  %v336_v62 = vperm.slane %v930_v2, 3  ;;  %v367_v49 = vperm.slane %v928_v57, 5  ;;  %v368_v55 = vperm.slane %v930_v2, 5 }
 0x1b7   :  { %v315_v63 = vpop.permute.xlu1 %314  ;;  %v289_v0 = vperm.slane %v932_v61, 0  ;;  %v290_v3 = vperm.slane %v934_v15, 0  ;;  %v365_v6 = vperm.slane %v932_v61, 5  ;;  %v366_v7 = vperm.slane %v934_v15, 5 }
 0x1b8   :  { %v295_v8 = vmul.f32 %v291_v16, %v287_v4  ;;  %v296_v9 = vmul.f32 %v292_v13, %v287_v4  ;;  %v301_v12 = vperm.slane %v932_v61, 1  ;;  %v302_v17 = vperm.slane %v934_v15, 1 }
 0x1b9   :  { %v293_v10 = vmul.f32 %v289_v0, %v287_v4  ;;  %v294_v11 = vmul.f32 %v290_v3, %v287_v4  ;;  %v303_v51 = vperm.slane %v928_v57, 1  ;;  %v304_v56 = vperm.slane %v930_v2, 1 }
 0x1ba   :  { %v317_v19 = vperm.slane %v932_v61, 2  ;;  %v318_v20 = vperm.slane %v934_v15, 2  ;;  %v305_v21 = vmul.f32 %v301_v12, %v299_v24  ;;  %v306_v22 = vmul.f32 %v302_v17, %v299_v24 }
 0x1bb   :  { %v319_v42 = vperm.slane %v928_v57, 2  ;;  %v320_v48 = vperm.slane %v930_v2, 2  ;;  %v339_v23 = vmul.f32 %v335_v14, %v926_v53  ;;  %v340_v25 = vmul.f32 %v336_v62, %v926_v53 }
 0x1bc   :  { %v307_v4 = vmul.f32 %v303_v51, %v299_v24  ;;  %v308_v43 = vmul.f32 %v304_v56, %v299_v24  ;;  %v309_v44 = vadd.f32 %v305_v21, %v293_v10  ;;  %v310_v45 = vadd.f32 %v306_v22, %v294_v11 }
 0x1bd   :  { %v323_v46 = vmul.f32 %v319_v42, %v315_v63  ;;  %v324_v59 = vmul.f32 %v320_v48, %v315_v63  ;;  %v371_v47 = vmul.f32 %v367_v49, %v363_v18  ;;  %v372_v50 = vmul.f32 %v368_v55, %v363_v18 }
 0x1be   :  { %v311_v52 = vadd.f32 %v307_v4, %v295_v8  ;;  %v312_v54 = vadd.f32 %v308_v43, %v296_v9  ;;  %v369_v58 = vmul.f32 %v365_v6, %v363_v18  ;;  %v370_v60 = vmul.f32 %v366_v7, %v363_v18  ;;  %v379_v8 = vpop.permute.xlu0 %378 }
 0x1bf   :  { %v321_v16 = vmul.f32 %v317_v19, %v315_v63  ;;  %v322_v13 = vmul.f32 %v318_v20, %v315_v63  ;;  %v381_v14 = vperm.slane %v932_v61, 6  ;;  %v382_v62 = vperm.slane %v934_v15, 6 }
 0x1c0   :  { %v347_v0 = vpop.permute.xlu1 %346  ;;  %v327_v3 = vadd.f32 %v323_v46, %v311_v52  ;;  %v328_v12 = vadd.f32 %v324_v59, %v312_v54  ;;  %v333_v11 = vperm.slane %v932_v61, 3  ;;  %v334_v49 = vperm.slane %v934_v15, 3 }
 0x1c1   :  { %v325_v24 = vadd.f32 %v321_v16, %v309_v44  ;;  %v326_v10 = vadd.f32 %v322_v13, %v310_v45  ;;  %v383_v55 = vperm.slane %v928_v57, 6  ;;  %v384_v6 = vperm.slane %v930_v2, 6 }
 0x1c2   :  { %v349_v7 = vperm.slane %v932_v61, 4  ;;  %v350_v63 = vperm.slane %v934_v15, 4  ;;  %v337_v9 = vmul.f32 %v333_v11, %v926_v53  ;;  %v338_v17 = vmul.f32 %v334_v49, %v926_v53 }
 0x1c3   :  { %v351_v51 = vperm.slane %v928_v57, 4  ;;  %v352_v56 = vperm.slane %v930_v2, 4  ;;  %v343_v19 = vadd.f32 %v339_v23, %v327_v3  ;;  %v344_v20 = vadd.f32 %v340_v25, %v328_v12 }
 0x1c4   :  { %v353_v18 = vmul.f32 %v349_v7, %v347_v0  ;;  %v354_v21 = vmul.f32 %v350_v63, %v347_v0  ;;  %v341_v22 = vadd.f32 %v337_v9, %v325_v24  ;;  %v342_v42 = vadd.f32 %v338_v17, %v326_v10 }
 0x1c5   :  { %v355_v48 = vmul.f32 %v351_v51, %v347_v0  ;;  %v356_v4 = vmul.f32 %v352_v56, %v347_v0  ;;  %v385_v43 = vmul.f32 %v381_v14, %v379_v8  ;;  %v386_v44 = vmul.f32 %v382_v62, %v379_v8 }
 0x1c6   :  { %v387_v45 = vmul.f32 %v383_v55, %v379_v8  ;;  %v388_v46 = vmul.f32 %v384_v6, %v379_v8  ;;  %v357_v59 = vadd.f32 %v353_v18, %v341_v22  ;;  %v358_v52 = vadd.f32 %v354_v21, %v342_v42  ;;  %v412_v8 = vpop.permute.xlu2 %411  ;;  %v517_v22 = vld [vmem:[%s1054_s9] sm:$0xff] }
 0x1c7   :  { %v359_v54 = vadd.f32 %v355_v48, %v343_v19  ;;  %v360_v53 = vadd.f32 %v356_v4, %v344_v20  ;;  %v397_v13 = vperm.slane %v932_v61, 7  ;;  %v398_v23 = vperm.slane %v934_v15, 7 }
 0x1c8   :  { %v399_v25 = vperm.slane %v928_v57, 7  ;;  %v400_v3 = vperm.slane %v930_v2, 7  ;;  %v373_v12 = vadd.f32 %v369_v58, %v357_v59  ;;  %v374_v24 = vadd.f32 %v370_v60, %v358_v52 }
 0x1c9   :  { %v395_v16 = vpop.permute.xlu1 %394  ;;  %v375_v0 = vadd.f32 %v371_v47, %v359_v54  ;;  %v376_v14 = vadd.f32 %v372_v50, %v360_v53 }
 0x1ca   :  { %v401_v62 = vmul.f32 %v397_v13, %v395_v16  ;;  %v402_v10 = vmul.f32 %v398_v23, %v395_v16  ;;  %v403_v11 = vmul.f32 %v399_v25, %v395_v16  ;;  %v404_v49 = vmul.f32 %v400_v3, %v395_v16 }
 0x1cb   :  { %v389_v55 = vadd.f32 %v385_v43, %v373_v12  ;;  %v390_v6 = vadd.f32 %v386_v44, %v374_v24  ;;  %v391_v7 = vadd.f32 %v387_v45, %v375_v0  ;;  %v392_v63 = vadd.f32 %v388_v46, %v376_v14 }
 0x1cd   :  { %v405_v61 = vadd.f32 %v401_v62, %v389_v55  ;;  %v406_v9 = vadd.f32 %v402_v10, %v390_v6  ;;  %v407_v15 = vadd.f32 %v403_v11, %v391_v7  ;;  %v408_v17 = vadd.f32 %v404_v49, %v392_v63 }
 0x1cf   :  { %v972_v57 = vadd.f32 %v412_v8, %v405_v61  ;;  %v974_v2 = vadd.f32 %v412_v8, %v406_v9  ;;  %v976_v58 = vadd.f32 %v412_v8, %v407_v15  ;;  %v978_v47 = vadd.f32 %v412_v8, %v408_v17 }
 0x1d1   :  { %v421_v50 = vadd.f32 %v978_v47, %v976_v58  ;;  %v418_v60 = vadd.f32 %v974_v2, %v972_v57  ;;  %v426_v51 = vmul.f32 %v972_v57, %v972_v57  ;;  %v427_v56 = vmul.f32 %v974_v2, %v974_v2 }
 0x1d2   :  { %v428_v20 = vmul.f32 %v976_v58, %v976_v58  ;;  %v429_v18 = vmul.f32 %v978_v47, %v978_v47 }
 0x1d3   :  { %422 = vadd.xlane.f32.xlu2 %v421_v50  ;;  %419 = vadd.xlane.f32.xlu1 %v418_v60  ;;  %v430_v19 = vadd.f32 %v427_v56, %v426_v51 }
 0x1d4   :  { %v433_v21 = vadd.f32 %v429_v18, %v428_v20 }
 0x1d5   :  { %431 = vadd.xlane.f32.xlu0 %v430_v19 }
 0x1db   :  { %434 = vadd.xlane.f32.xlu1 %v433_v21 }
 0x1e9   :  { %529 = vperm.xlu0 %658, %v517_v22  }
 0x1eb   :  { %521 = vperm.xlu2 %657, %v517_v22  }
 0x1f1   :  { %663 = vset.pattern.permute.xlu0 %v710_v1 }
 0x1f3   :  { %660 = vset.pattern.permute.xlu2 %v713_v5 }
 0x1f4   :  { %541 = vperm.xlu1 %659, %v517_v22   ;;  %553 = vperm.xlu2 %660, %v517_v22  }
 0x1fc   :  { %662 = vset.pattern.permute.xlu2 %v710_v1  ;;  %661 = vset.pattern.permute.xlu1 %v710_v1 }
 0x246   :  { %v420_v42 = vpop.xlane.xlu1 %419  ;;  %v423_v43 = vpop.xlane.xlu2 %422 }
 0x247   :  { %v999_v48 = vmul.f32 0.00390625, %v420_v42  ;;  %v1003_v59 = vmul.f32 0.00390625, %v423_v43 }
 0x248   :  { %v432_v4 = vpop.xlane.xlu0 %431 }
 0x249   :  { %v438_v44 = vmul.f32 %v999_v48, %v999_v48  ;;  %v436_v45 = vmul.f32 0.00390625, %v432_v4  ;;  %v439_v53 = vmul.f32 %v1003_v59, %v1003_v59 }
 0x24b   :  { %v440_v46 = vsub.f32 %v436_v45, %v438_v44 }
 0x24d   :  { %v442_v52 = vmax.f32 %v440_v46, 0.0 }
 0x24e   :  { %v435_v5 = vpop.xlane.xlu1 %434 }
 0x24f   :  { %v444_v54 = vadd.f32 1e-05, %v442_v52  ;;  %v437_v16 = vmul.f32 0.00390625, %v435_v5 }
 0x251   :  { %674 = vrcp.f32 %v444_v54  ;;  %v441_v1 = vsub.f32 %v437_v16, %v439_v53  ;;  %v457_v10 = vand.u32 2147483648, %v444_v54  ;;  %vm451_vm0 = vweird.f32 %v444_v54 }
 0x252   :  { %v455_v11 = vand.u32 2147483647, %v444_v54 }
 0x253   :  { %v443_v13 = vmax.f32 %v441_v1, 0.0  ;;  %v458_v8 = vor.u32 1.1754944e-38, %v457_v10 }
 0x254   :  { %vm456_vm3 = vcmp.eq.f32.partialorder %v455_v11, 8.507059e+37 }
 0x255   :  { %v445_v23 = vadd.f32 1e-05, %v443_v13 }
 0x257   :  { %v675_v25 = vpop.eup %674  ;;  %676 = vrcp.f32 %v445_v23  ;;  %v472_v55 = vand.u32 2147483648, %v445_v23  ;;  %v470_v63 = vand.u32 2147483647, %v445_v23  ;;  %vm466_vm4 = vweird.f32 %v445_v23 }
 0x258   :  { %v447_v3 = vmul.f32 %v675_v25, %v444_v54  ;;  %vm452_vm15 = vweird.f32 %v675_v25  ;;  %678 = vrsqrt.f32 %v444_v54 }
 0x259   :  { %680 = vrsqrt.f32 %v445_v23  ;;  %vm453_vm1 = vmor %vm451_vm0, %vm452_vm15  ;;  %v473_v17 = vor.u32 1.1754944e-38, %v472_v55  ;;  %vm471_vm6 = vcmp.eq.f32.partialorder %v470_v63, 8.507059e+37  ;;  %v518_v63 = vld [vmem:[%s1055_s10] sm:$0xff] }
 0x25a   :  { %v448_v12 = vsub.f32 1.0, %v447_v3  ;;  %v47_v3 = vld [vmem:[%s1052_s7] sm:$0xff] }
 0x25c   :  { %v449_v24 = vmul.f32 %v675_v25, %v448_v12 }
 0x25d   :  { %v677_v0 = vpop.eup %676 }
 0x25e   :  { %v450_v14 = vadd.f32 %v675_v25, %v449_v24  ;;  %v462_v62 = vmul.f32 %v677_v0, %v445_v23  ;;  %vm467_vm2 = vweird.f32 %v677_v0  ;;  %v679_v9 = vpop.eup %678 }
 0x25f   :  { %vm468_vm5 = vmor %vm466_vm4, %vm467_vm2  ;;  %v681_v50 = vpop.eup %680  ;;  %v490_v18 = vmul.f32 %v679_v9, %v444_v54  ;;  %vm496_vm7 = vweird.f32 %v679_v9  ;;  %v48_v54 = vld [vmem:[%s1053_s8] sm:$0xff]  ;;  %s718_s8 = smov [#allocation2]  }
 0x260   :  { %v463_v49 = vsub.f32 1.0, %v462_v62  ;;  %v454_v6 = vsel %vm453_vm1, %v675_v25, %v450_v14  ;;  %v500_v20 = vmul.f32 %v681_v50, %v445_v23  ;;  %vm506_vm8 = vweird.f32 %v681_v50  ;;  %vm497_vm9 = vmor %vm451_vm0, %vm496_vm7  ;;  %s617_s10 = sshll.u32 %s718_s8, 4  ;;  %s618_s10 = int_to_ptr.vmem [resolvable:$true] %s617_s10 }
 0x261   :  { %v459_v15 = vsel %vm456_vm3, %v458_v8, %v454_v6  ;;  %v491_v4 = vmul.f32 %v679_v9, %v490_v18  ;;  %vm507_vm10 = vmor %vm466_vm4, %vm506_vm8 }
 0x262   :  { %v464_v7 = vmul.f32 %v677_v0, %v463_v49  ;;  %v460_v56 = vmul.f32 %v459_v15, %v442_v52  ;;  %v501_v42 = vmul.f32 %v681_v50, %v500_v20 }
 0x263   :  { %v492_v45 = vmul.f32 0.5, %v491_v4 }
 0x264   :  { %v465_v61 = vadd.f32 %v677_v0, %v464_v7  ;;  %v502_v44 = vmul.f32 0.5, %v501_v42 }
 0x265   :  { %v493_v5 = vsub.f32 1.5, %v492_v45 }
 0x266   :  { %v469_v60 = vsel %vm468_vm5, %v677_v0, %v465_v61  ;;  %v503_v46 = vsub.f32 1.5, %v502_v44  ;;  %v522_v61 = vpop.permute.xlu2 %521  ;;  %v542_v15 = vpop.permute.xlu1 %541 }
 0x267   :  { %v474_v51 = vsel %vm471_vm6, %v473_v17, %v469_v60  ;;  %v494_v52 = vmul.f32 %v679_v9, %v493_v5  ;;  %v530_v17 = vpop.permute.xlu0 %529  ;;  %v526_v20 = vmul.f32 %v522_v61, %v805_v28  ;;  %v527_v18 = vmul.f32 %v522_v61, %v807_v29 }
 0x268   :  { %v475_v19 = vmul.f32 %v474_v51, %v443_v13  ;;  %v504_v25 = vmul.f32 %v681_v50, %v503_v46  ;;  %v533_v60 = vmul.f32 %v530_v17, %v819_v35  ;;  %v547_v35 = vmul.f32 %v542_v15, %v815_v33 }
 0x269   :  { %v498_v0 = vsel %vm497_vm9, %v679_v9, %v494_v52 }
 0x26a   :  { %v476_v21 = vadd.f32 %v475_v19, %v460_v56  ;;  %v508_v24 = vsel %vm507_vm10, %v681_v50, %v504_v25  ;;  %v509_v10 = vmul.f32 %v498_v0, %v47_v3  ;;  %v532_v50 = vmul.f32 %v530_v17, %v817_v34 }
 0x26b   :  { %v510_v62 = vmul.f32 %v508_v24, %v47_v3  ;;  %v524_v56 = vmul.f32 %v522_v61, %v801_v26  ;;  %v525_v19 = vmul.f32 %v522_v61, %v803_v27  ;;  %v546_v34 = vmul.f32 %v542_v15, %v813_v32 }
 0x26c   :  { %v477_v22 = vmul.f32 0.5, %v476_v21  ;;  %v544_v21 = vmul.f32 %v542_v15, %v809_v30 }
 0x26d   :  { %v536_v42 = vadd.f32 %v532_v50, %v524_v56 }
 0x26e   :  { %v478_v43 = vadd.f32 1e-05, %v477_v22  ;;  %v554_v9 = vpop.permute.xlu2 %553  ;;  %v545_v22 = vmul.f32 %v542_v15, %v811_v31 }
 0x26f   :  { %v556_v26 = vmul.f32 %v554_v9, %v825_v38  ;;  %v557_v27 = vmul.f32 %v554_v9, %v827_v39  ;;  %v558_v28 = vmul.f32 %v554_v9, %v829_v40  ;;  %v559_v29 = vmul.f32 %v554_v9, %v831_v41 }
 0x270   :  { %682 = vrsqrt.f32 %v478_v43  ;;  %vm485_vm12 = vweird.f32 %v478_v43  ;;  %v548_v30 = vadd.f32 %v544_v21, %v536_v42 }
 0x276   :  { %v683_v53 = vpop.eup %682 }
 0x277   :  { %v480_v16 = vmul.f32 %v683_v53, %v478_v43  ;;  %vm486_vm11 = vweird.f32 %v683_v53 }
 0x278   :  { %vm487_vm13 = vmor %vm485_vm12, %vm486_vm11 }
 0x279   :  { %v481_v1 = vmul.f32 %v683_v53, %v480_v16  ;;  %v560_v16 = vadd.f32 %v556_v26, %v548_v30 }
 0x27b   :  { %v482_v13 = vmul.f32 0.5, %v481_v1 }
 0x27d   :  { %v483_v12 = vsub.f32 1.5, %v482_v13 }
 0x27f   :  { %v484_v14 = vmul.f32 %v683_v53, %v483_v12 }
 0x281   :  { %v488_v11 = vsel %vm487_vm13, %v683_v53, %v484_v14 }
 0x282   :  { %v512_v49 = vmul.f32 %v510_v62, %v488_v11  ;;  %v511_v55 = vmul.f32 %v509_v10, %v488_v11 }
 0x284   :  { %580 = vperm.xlu2 %662, %v512_v49   ;;  %575 = vperm.xlu1 %661, %v511_v55   ;;  %v514_v23 = vmul.f32 %v512_v49, %v1003_v59  ;;  %v513_v7 = vmul.f32 %v511_v55, %v999_v48  ;;  %v534_v59 = vmul.f32 %v530_v17, %v821_v36 }
 0x285   :  { %v535_v48 = vmul.f32 %v530_v17, %v823_v37  ;;  %v537_v37 = vadd.f32 %v533_v60, %v525_v19 }
 0x286   :  { %v516_v6 = vsub.f32 %v48_v54, %v514_v23  ;;  %v515_v8 = vsub.f32 %v48_v54, %v513_v7  ;;  %v538_v4 = vadd.f32 %v534_v59, %v526_v20 }
 0x287   :  { %v539_v43 = vadd.f32 %v535_v48, %v527_v18  ;;  %v549_v44 = vadd.f32 %v545_v22, %v537_v37 }
 0x288   :  { %594 = vperm.xlu0 %663, %v516_v6   ;;  %v550_v31 = vadd.f32 %v546_v34, %v538_v4 }
 0x289   :  { %v551_v45 = vadd.f32 %v547_v35, %v539_v43  ;;  %v561_v39 = vadd.f32 %v557_v27, %v549_v44 }
 0x28a   :  { %v562_v1 = vadd.f32 %v558_v28, %v550_v31 }
 0x28b   :  { %v563_v40 = vadd.f32 %v559_v29, %v551_v45 }
 0x28c   :  { %566 = vperm.xlu1 %661, %v518_v63   ;;  %589 = vperm.xlu2 %662, %v515_v8  }
 0x2de   :  { %v581_v51 = vpop.permute.xlu2 %580 }
 0x2df   :  { %v585_v5 = vmul.f32 %v581_v51, %v976_v58  ;;  %v586_v53 = vmul.f32 %v581_v51, %v978_v47 }
 0x2e6   :  { %v590_v38 = vpop.permute.xlu2 %589 }
 0x2f6   :  { %v576_v36 = vpop.permute.xlu1 %575 }
 0x2f7   :  { %v583_v32 = vmul.f32 %v576_v36, %v972_v57  ;;  %v584_v33 = vmul.f32 %v576_v36, %v974_v2 }
 0x2f9   :  { %v597_v25 = vadd.f32 %v590_v38, %v583_v32  ;;  %v598_v41 = vadd.f32 %v590_v38, %v584_v33 }
 0x2fa   :  { %v595_v46 = vpop.permute.xlu0 %594 }
 0x2fb   :  { %v599_v52 = vadd.f32 %v595_v46, %v585_v5  ;;  %v600_v13 = vadd.f32 %v595_v46, %v586_v53 }
 0x2fe   :  { %v567_v3 = vpop.permute.xlu1 %566 }
 0x2ff   :  { %v569_v12 = vadd.f32 %v567_v3, %v560_v16  ;;  %v570_v24 = vadd.f32 %v567_v3, %v561_v39  ;;  %v571_v57 = vadd.f32 %v567_v3, %v562_v1  ;;  %v572_v0 = vadd.f32 %v567_v3, %v563_v40 }
 0x301   :  { %v601_v2 = vadd.f32 %v597_v25, %v569_v12  ;;  %v602_v14 = vadd.f32 %v598_v41, %v570_v24  ;;  %v603_v62 = vadd.f32 %v599_v52, %v571_v57  ;;  %v604_v58 = vadd.f32 %v600_v13, %v572_v0 }
 0x303   :  { %v605_v47 = vmax.f32 %v601_v2, 0.0  ;;  %v606_v10 = vmax.f32 %v602_v14, 0.0  ;;  %v607_v11 = vmax.f32 %v603_v62, 0.0  ;;  %v608_v49 = vmax.f32 %v604_v58, 0.0 }
 0x305   :  { %609 = vst [vmem:[#allocation2] sm:$0xff] %v605_v47 }
 0x306   :  { %610 = vst [vmem:[#allocation2 + $0x8] sm:$0xff] %v606_v10 }
 0x307   :  { %611 = vst [vmem:[#allocation2 + $0x10] sm:$0xff] %v607_v11 }
 0x308   :  { %612 = vst [vmem:[#allocation2 + $0x18] sm:$0xff] %v608_v49 }
 0x309   :  { %625 = dma.vmem_to_hbm [thread:$0]  %s618_s10, 512, %s620_s15, [#allocation3], %s719_s16, %s719_s16, %s720_s17  }
 0x30a   :  { %708 = dma.done.wait [#allocation3], 512  }
 0x30b   :  { %709 = vsyncadd [#allocation3], 4294966784 }
 0x30c   :  { %630 = vsyncpa [#allocation3], 1 }

</bundles_post_ra>
